<compile_context>
chip_gen: v7x
topology: tpu7x:2x2x1
jax: 0.10.0
libtpu: 0.0.40
codegen_flags: <defaults>
</compile_context>

<pallas_src>
import jax
import jax.numpy as jnp
from jax import lax
from jax.experimental import pallas as pl
from jax.experimental.pallas import tpu as pltpu


# --------------------------------------------------------------------------
# Hardware-aware budgets
# --------------------------------------------------------------------------
def _vmem_capacity_bytes():
    try:
        return int(pltpu.get_tpu_info().vmem_capacity_bytes)
    except Exception:
        return 64 << 20            # conservative default (v7x per-TC VMEM)


def _budgets():
    cap = _vmem_capacity_bytes()
    if cap <= (64 << 20):          # v7x: 64 MiB physical -> leave real headroom
        return 12 << 20, 52 << 20  # (L^T tile budget, vmem_limit cap)
    return 16 << 20, 100 << 20     # v5e / v6e: 128 MiB physical


def _pick_tile_n(D, budget_bytes, itemsize):
    """Output-column tile: divisor of D, multiple of 128, preferring 256-multiples
    (full MXU width on v6e/v7x), >=2 N-tiles (megacore), then size; the
    double-buffered (D, tn) L^T tile must fit `budget_bytes`."""
    if D % 128 != 0:
        return D
    cap_elems = max(128, budget_bytes // (2 * D * itemsize))
    cands = [t for t in range(128, D + 1, 128) if D % t == 0 and t <= cap_elems]
    if not cands:
        return D

    def score(t):
        return (t % 256 == 0, t < D, t)

    return max(cands, key=score)


# --------------------------------------------------------------------------
# Kernel A: tiny-problem path.  One invocation, one wide matmul against the
# pre-concatenated (D, K*D) L^T, then per-component lane-slice selection.
# --------------------------------------------------------------------------
def _gmm_small_kernel(comp_ref, ltcat_ref, z_ref, o_ref):
    """comp_ref: (bs,1) i32 | ltcat_ref: (D, K*D) wdt (columns = [L_0^T .. L_{K-1}^T])
    z_ref: (bs,D) wdt | o_ref: (bs,D) f32 (mean added outside the kernel)."""
    D = z_ref.shape[1]
    K = ltcat_ref.shape[1] // D
    comp = comp_ref[...]                                   # (bs, 1) int32
    big = jnp.dot(z_ref[...], ltcat_ref[...],
                  preferred_element_type=jnp.float32)      # (bs, K*D), one MXU pass
    acc = jnp.zeros(o_ref.shape, jnp.float32)
    for k in range(K):                                     # K static & small here
        acc = jnp.where(comp == k, big[:, k * D:(k + 1) * D], acc)
    o_ref[...] = acc


# --------------------------------------------------------------------------
# Kernel B: pipelined path.  grid = (bs tiles, D//tn, k_slots), K innermost.
# Only active components are streamed (scalar-prefetched compacted ids);
# padded slots repeat the previous block index (no extra DMA) and are gated.
# --------------------------------------------------------------------------
def _gmm_tiled_kernel(ids_ref, nact_ref, comp_ref, lt_ref, z_ref, o_ref):
    """ids_ref: (k_slots,) i32 SMEM | nact_ref: (1,) i32 SMEM
    comp_ref: (bm,1) i32 | lt_ref: (1,D,tn) wdt (= L_k^T tile)
    z_ref: (bm,D) wdt | o_ref: (bm,tn) f32 (resident across the k axis)."""
    k = pl.program_id(2)

    @pl.when(k == 0)
    def _init():
        o_ref[...] = jnp.zeros_like(o_ref)

    @pl.when(k < nact_ref[0])
    def _select():
        cid = ids_ref[k]
        samp = jnp.dot(z_ref[...], lt_ref[0],              # pre-transposed L
                       preferred_element_type=jnp.float32)
        o_ref[...] = jnp.where(comp_ref[...] == cid, samp, o_ref[...])


def gmm_linear_forward(z2, comp, M, L_T, *, tile_n=None, tile_b=256,
                       weight_dtype=jnp.bfloat16):
    """Masked GMM affine transform: out[b] = M[comp[b]] + z2[b] @ L_T[comp[b]].

    z2:   (bs, D)     latent samples
    comp: (bs,) int   component id per sample
    M:    (K, D)      component means (f32; added outside the kernel)
    L_T:  (K, D, D)   pre-transposed scales (L_k^T), ideally already in
                      `weight_dtype` (cached by the module -> no per-call cast).
    Returns (bs, D) float32.
    """
    bs, D = z2.shape
    K = L_T.shape[0]
    wdt = weight_dtype
    w_item = jnp.dtype(wdt).itemsize

    z_w = z2.astype(wdt)
    lt_w = L_T.astype(wdt)                       # no-op when caller caches in wdt
    comp_i = comp.astype(jnp.int32)
    comp2 = comp_i.reshape(bs, 1)
    mean = jnp.take(M.astype(jnp.float32), comp_i, axis=0)   # (bs, D), added in XLA

    lt_budget, limit_cap = _budgets()

    # ---- tiny-problem path: single invocation, one wide matmul ----
    small_bytes = (K * D * D * w_item + bs * D * w_item + bs * K * D * 4
                   + bs * D * 4 + bs * 128 * 4)
    if tile_n is None and small_bytes <= (6 << 20):
        lt_cat = jnp.swapaxes(lt_w, 0, 1).reshape(D, K * D)  # tiny by construction
        sel = pl.pallas_call(
            _gmm_small_kernel,
            out_shape=jax.ShapeDtypeStruct((bs, D), jnp.float32),
            in_specs=[pl.BlockSpec(memory_space=pltpu.MemorySpace.VMEM)] * 3,
            out_specs=pl.BlockSpec(memory_space=pltpu.MemorySpace.VMEM),
            compiler_params=pltpu.CompilerParams(
                vmem_limit_bytes=int(min(max(2 * small_bytes + (4 << 20),
                                             32 << 20), limit_cap))),
        )(comp2, lt_cat, z_w)
        return sel + mean

    # ---- pipelined path: output (N) tile ----
    if tile_n is None:
        tn = _pick_tile_n(D, lt_budget, w_item)
    else:
        tn = tile_n
        assert D % tn == 0 and (tn % 128 == 0 or tn == D), (D, tn)

    # ---- batch (bs) tile: bounds resident z/out and gives megacore a parallel
    #      axis even when D//tn == 1 ----
    if bs <= tile_b:
        bm, bs_pad = bs, bs
    else:
        bm = tile_b
        bs_pad = ((bs + bm - 1) // bm) * bm
    if bs_pad != bs:
        z_w = jnp.pad(z_w, ((0, bs_pad - bs), (0, 0)))
        comp2 = jnp.pad(comp2, ((0, bs_pad - bs), (0, 0)))

    # Compacted active component ids (at most min(K, bs) distinct components can
    # be selected).  Padded slots repeat the last active id (block index
    # unchanged -> DMA deduped) and are gated off in-kernel.
    counts = jnp.zeros((K,), jnp.int32).at[comp_i].add(1)
    active = counts > 0
    n_active = jnp.sum(active.astype(jnp.int32))
    sort_keys = jnp.where(active, jnp.arange(K, dtype=jnp.int32),
                          K + jnp.arange(K, dtype=jnp.int32))
    order = jnp.argsort(sort_keys).astype(jnp.int32)       # active ids first
    k_slots = min(K, bs)
    slot = jnp.minimum(jnp.arange(k_slots, dtype=jnp.int32), n_active - 1)
    ids = order[slot]                                       # (k_slots,)
    nact = n_active.reshape(1)

    # VMEM working set: Pallas allocates 2 pipeline buffers per spec (including
    # constant-index z/comp); comp is lane-padded to 128.
    work = (2 * D * tn * w_item        # L^T tiles
            + 2 * bm * D * w_item      # z
            + 2 * bm * 128 * 4         # comp
            + 2 * bm * tn * 4)         # out accumulator
    vmem_limit = int(min(max(work + (4 << 20), 32 << 20), limit_cap))

    grid = (bs_pad // bm, D // tn, k_slots)
    sel = pl.pallas_call(
        _gmm_tiled_kernel,
        out_shape=jax.ShapeDtypeStruct((bs_pad, D), jnp.float32),
        grid_spec=pltpu.PrefetchScalarGridSpec(
            num_scalar_prefetch=2,
            grid=grid,
            in_specs=[
                pl.BlockSpec((bm, 1), lambda b, n, k, ids, na: (b, 0)),            # comp
                pl.BlockSpec((1, D, tn), lambda b, n, k, ids, na: (ids[k], 0, n)),  # L^T
                pl.BlockSpec((bm, D), lambda b, n, k, ids, na: (b, 0)),             # z
            ],
            out_specs=pl.BlockSpec((bm, tn), lambda b, n, k, ids, na: (b, n)),
        ),
        compiler_params=pltpu.CompilerParams(
            dimension_semantics=("parallel", "parallel", "arbitrary"),
            vmem_limit_bytes=vmem_limit,
        ),
    )(ids, nact, comp2, lt_w, z_w)
    if bs_pad != bs:
        sel = sel[:bs]
    return sel + mean


class ReparameterizedGMMLinearPallas:
    """JAX/Pallas port of ReparameterizedGMM_Linear (forward only)."""

    def __init__(self, n_patch, n_z, n_components=10, key=None,
                 weight_dtype=jnp.bfloat16):
        self.n_patch = n_patch
        self.n_z = n_z
        self.n_components = n_components
        self.weight_dtype = weight_dtype
        D = n_patch * n_z
        key = jax.random.PRNGKey(0) if key is None else key
        km, _ = jax.random.split(key)
        # Mirrors torch __init__: mvn.m ~ randn(1, D); mvn.L = eye(D); logits = 0.
        self.M = jax.random.normal(km, (n_components, D), dtype=jnp.float32)
        self.mixing_weight_logits = jnp.zeros((n_components,), dtype=jnp.float32)
        self.set_L(jnp.tile(jnp.eye(D, dtype=jnp.float32)[None],
                            (n_components, 1, 1)))

    def set_L(self, L):
        """Update scales; caches L^T in the kernel compute dtype ONCE."""
        self.L = L
        self.L_T_w = jnp.swapaxes(L, 1, 2).astype(self.weight_dtype)

    def sample_components(self, n, key):
        # torch.multinomial(softmax(logits), n, replacement=True) == categorical
        logits = jnp.broadcast_to(self.mixing_weight_logits,
                                  (n, self.n_components))
        return jax.random.categorical(key, logits, axis=-1).astype(jnp.int32)

    def forward(self, z, key):
        bs = z.shape[0]
        D = self.n_patch * self.n_z
        comp = self.sample_components(bs, key)                # (bs,)
        z2 = z.reshape(bs, D)
        x = gmm_linear_forward(z2, comp, self.M, self.L_T_w,
                               weight_dtype=self.weight_dtype)  # (bs, D)
        return x.reshape(bs, self.n_patch, self.n_z), comp


def _reference(z2, comp, M, L, weight_dtype=jnp.bfloat16):
    """Pure-JAX reference using the same compute-dtype matmul as the kernel."""
    zb = z2.astype(weight_dtype)
    ltb = jnp.swapaxes(L, 1, 2).astype(weight_dtype)
    samps = M[:, None, :].astype(jnp.float32) + jnp.einsum(
        "bd,kde->kbe", zb, ltb, preferred_element_type=jnp.float32)
    return samps[comp, jnp.arange(z2.shape[0])]               # (bs, D)


if __name__ == "__main__":
    # ---- test 1: toy shapes (single-invocation path, module forward) ----
    n_patch, n_z, n_components, bs = 4, 8, 10, 8
    D = n_patch * n_z
    root = jax.random.PRNGKey(0)
    k_params, k_L, k_z, k_comp = jax.random.split(root, 4)

    gmm = ReparameterizedGMMLinearPallas(n_patch, n_z, n_components, key=k_params)
    # Non-trivial scale matrices so the matmul path is actually exercised
    # (the module initializes L_k = I like the PyTorch code).
    gmm.set_L(0.3 * jax.random.normal(k_L, (n_components, D, D), dtype=jnp.float32))

    z = jax.random.normal(k_z, (bs, D), dtype=jnp.float32)
    out, comp = gmm.forward(z, k_comp)
    out = jax.block_until_ready(out)
    assert out.shape == (bs, n_patch, n_z)
    ref = _reference(z, comp, gmm.M, gmm.L)
    assert jnp.allclose(out.reshape(bs, D), ref, atol=2e-3, rtol=2e-3)

    # ---- test 2: pipelined path, explicit tn, bs < K (active-component
    #              compaction / padded-slot gating) ----
    bs2, D2, K2 = 16, 256, 24
    kk = jax.random.split(jax.random.PRNGKey(1), 4)
    M2 = jax.random.normal(kk[0], (K2, D2), dtype=jnp.float32)
    L2 = 0.1 * jax.random.normal(kk[1], (K2, D2, D2), dtype=jnp.float32)
    L2_T = jnp.swapaxes(L2, 1, 2).astype(jnp.bfloat16)        # cached once
    z2 = jax.random.normal(kk[2], (bs2, D2), dtype=jnp.float32)
    comp2 = jax.random.categorical(
        kk[3], jnp.zeros((bs2, K2), jnp.float32), axis=-1).astype(jnp.int32)
    out2 = gmm_linear_forward(z2, comp2, M2, L2_T, tile_n=128)
    out2 = jax.block_until_ready(out2)
    assert jnp.allclose(out2, _reference(z2, comp2, M2, L2), atol=2e-3, rtol=2e-3)

    # ---- test 3: pipelined path, auto tile selection, bs tiling + padding ----
    bs3, D3, K3 = 320, 512, 16
    kb = jax.random.split(jax.random.PRNGKey(2), 4)
    M3 = jax.random.normal(kb[0], (K3, D3), dtype=jnp.float32)
    L3 = 0.1 * jax.random.normal(kb[1], (K3, D3, D3), dtype=jnp.float32)
    L3_T = jnp.swapaxes(L3, 1, 2).astype(jnp.bfloat16)        # cached once
    z3 = jax.random.normal(kb[2], (bs3, D3), dtype=jnp.float32)
    comp3 = jax.random.categorical(
        kb[3], jnp.zeros((bs3, K3), jnp.float32), axis=-1).astype(jnp.int32)
    out3 = gmm_linear_forward(z3, comp3, M3, L3_T)
    out3 = jax.block_until_ready(out3)
    assert jnp.allclose(out3, _reference(z3, comp3, M3, L3), atol=2e-3, rtol=2e-3)

    print("KERNEL_OK")
</pallas_src>

<mosaic_0001>
module attributes {stable_mosaic.version = 11 : i64} {
  func.func @_gmm_small_kernel(%arg0: memref<8x1xi32, #tpu.memory_space<vmem>>, %arg1: memref<32x320xbf16, #tpu.memory_space<vmem>>, %arg2: memref<8x32xbf16, #tpu.memory_space<vmem>>, %arg3: memref<8x32xf32, #tpu.memory_space<vmem>>) attributes {dimension_semantics = [], scalar_prefetch = 0 : i64, scratch_operands = 0 : i64, tpu.core_type = #tpu.core_type<tc>} {
    %c0 = arith.constant 0 : index
    %c0_0 = arith.constant 0 : index
    %0 = vector.load %arg0[%c0, %c0_0] : memref<8x1xi32, #tpu.memory_space<vmem>>, vector<8x1xi32>
    %c0_1 = arith.constant 0 : index
    %c0_2 = arith.constant 0 : index
    %1 = vector.load %arg2[%c0_1, %c0_2] : memref<8x32xbf16, #tpu.memory_space<vmem>>, vector<8x32xbf16>
    %c0_3 = arith.constant 0 : index
    %c0_4 = arith.constant 0 : index
    %2 = vector.load %arg1[%c0_3, %c0_4] : memref<32x320xbf16, #tpu.memory_space<vmem>>, vector<32x320xbf16>
    %cst = arith.constant dense<0.000000e+00> : vector<8x320xf32>
    %3 = tpu.matmul %1, %2, %cst {dimension_numbers = #tpu.dot_dimension_numbers<[1], [0], [0], [1], [0, 0, 1, 1], [], []>} : vector<8x32xbf16>, vector<32x320xbf16>, vector<8x320xf32> -> vector<8x320xf32>
    %cst_5 = arith.constant 0.000000e+00 : f32
    %4 = vector.broadcast %cst_5 : f32 to vector<8x32xf32>
    %c0_i32 = arith.constant 0 : i32
    %5 = vector.broadcast %c0_i32 : i32 to vector<8x1xi32>
    %6 = arith.cmpi eq, %0, %5 : vector<8x1xi32>
    %7 = vector.extract_strided_slice %3 {offsets = [0, 0], sizes = [8, 32], strides = [1, 1]} : vector<8x320xf32> to vector<8x32xf32>
    %8 = vector.shape_cast %6 : vector<8x1xi1> to vector<8x1xi1>
    %9 = vector.broadcast %8 : vector<8x1xi1> to vector<8x32xi1>
    %10 = arith.select %9, %7, %4 : vector<8x32xi1>, vector<8x32xf32>
    %c1_i32 = arith.constant 1 : i32
    %11 = vector.broadcast %c1_i32 : i32 to vector<8x1xi32>
    %12 = arith.cmpi eq, %0, %11 : vector<8x1xi32>
    %13 = vector.extract_strided_slice %3 {offsets = [0, 32], sizes = [8, 32], strides = [1, 1]} : vector<8x320xf32> to vector<8x32xf32>
    %14 = vector.shape_cast %12 : vector<8x1xi1> to vector<8x1xi1>
    %15 = vector.broadcast %14 : vector<8x1xi1> to vector<8x32xi1>
    %16 = arith.select %15, %13, %10 : vector<8x32xi1>, vector<8x32xf32>
    %c2_i32 = arith.constant 2 : i32
    %17 = vector.broadcast %c2_i32 : i32 to vector<8x1xi32>
    %18 = arith.cmpi eq, %0, %17 : vector<8x1xi32>
    %19 = vector.extract_strided_slice %3 {offsets = [0, 64], sizes = [8, 32], strides = [1, 1]} : vector<8x320xf32> to vector<8x32xf32>
    %20 = vector.shape_cast %18 : vector<8x1xi1> to vector<8x1xi1>
    %21 = vector.broadcast %20 : vector<8x1xi1> to vector<8x32xi1>
    %22 = arith.select %21, %19, %16 : vector<8x32xi1>, vector<8x32xf32>
    %c3_i32 = arith.constant 3 : i32
    %23 = vector.broadcast %c3_i32 : i32 to vector<8x1xi32>
    %24 = arith.cmpi eq, %0, %23 : vector<8x1xi32>
    %25 = vector.extract_strided_slice %3 {offsets = [0, 96], sizes = [8, 32], strides = [1, 1]} : vector<8x320xf32> to vector<8x32xf32>
    %26 = vector.shape_cast %24 : vector<8x1xi1> to vector<8x1xi1>
    %27 = vector.broadcast %26 : vector<8x1xi1> to vector<8x32xi1>
    %28 = arith.select %27, %25, %22 : vector<8x32xi1>, vector<8x32xf32>
    %c4_i32 = arith.constant 4 : i32
    %29 = vector.broadcast %c4_i32 : i32 to vector<8x1xi32>
    %30 = arith.cmpi eq, %0, %29 : vector<8x1xi32>
    %31 = vector.extract_strided_slice %3 {offsets = [0, 128], sizes = [8, 32], strides = [1, 1]} : vector<8x320xf32> to vector<8x32xf32>
    %32 = vector.shape_cast %30 : vector<8x1xi1> to vector<8x1xi1>
    %33 = vector.broadcast %32 : vector<8x1xi1> to vector<8x32xi1>
    %34 = arith.select %33, %31, %28 : vector<8x32xi1>, vector<8x32xf32>
    %c5_i32 = arith.constant 5 : i32
    %35 = vector.broadcast %c5_i32 : i32 to vector<8x1xi32>
    %36 = arith.cmpi eq, %0, %35 : vector<8x1xi32>
    %37 = vector.extract_strided_slice %3 {offsets = [0, 160], sizes = [8, 32], strides = [1, 1]} : vector<8x320xf32> to vector<8x32xf32>
    %38 = vector.shape_cast %36 : vector<8x1xi1> to vector<8x1xi1>
    %39 = vector.broadcast %38 : vector<8x1xi1> to vector<8x32xi1>
    %40 = arith.select %39, %37, %34 : vector<8x32xi1>, vector<8x32xf32>
    %c6_i32 = arith.constant 6 : i32
    %41 = vector.broadcast %c6_i32 : i32 to vector<8x1xi32>
    %42 = arith.cmpi eq, %0, %41 : vector<8x1xi32>
    %43 = vector.extract_strided_slice %3 {offsets = [0, 192], sizes = [8, 32], strides = [1, 1]} : vector<8x320xf32> to vector<8x32xf32>
    %44 = vector.shape_cast %42 : vector<8x1xi1> to vector<8x1xi1>
    %45 = vector.broadcast %44 : vector<8x1xi1> to vector<8x32xi1>
    %46 = arith.select %45, %43, %40 : vector<8x32xi1>, vector<8x32xf32>
    %c7_i32 = arith.constant 7 : i32
    %47 = vector.broadcast %c7_i32 : i32 to vector<8x1xi32>
    %48 = arith.cmpi eq, %0, %47 : vector<8x1xi32>
    %49 = vector.extract_strided_slice %3 {offsets = [0, 224], sizes = [8, 32], strides = [1, 1]} : vector<8x320xf32> to vector<8x32xf32>
    %50 = vector.shape_cast %48 : vector<8x1xi1> to vector<8x1xi1>
    %51 = vector.broadcast %50 : vector<8x1xi1> to vector<8x32xi1>
    %52 = arith.select %51, %49, %46 : vector<8x32xi1>, vector<8x32xf32>
    %c8_i32 = arith.constant 8 : i32
    %53 = vector.broadcast %c8_i32 : i32 to vector<8x1xi32>
    %54 = arith.cmpi eq, %0, %53 : vector<8x1xi32>
    %55 = vector.extract_strided_slice %3 {offsets = [0, 256], sizes = [8, 32], strides = [1, 1]} : vector<8x320xf32> to vector<8x32xf32>
    %56 = vector.shape_cast %54 : vector<8x1xi1> to vector<8x1xi1>
    %57 = vector.broadcast %56 : vector<8x1xi1> to vector<8x32xi1>
    %58 = arith.select %57, %55, %52 : vector<8x32xi1>, vector<8x32xf32>
    %c9_i32 = arith.constant 9 : i32
    %59 = vector.broadcast %c9_i32 : i32 to vector<8x1xi32>
    %60 = arith.cmpi eq, %0, %59 : vector<8x1xi32>
    %61 = vector.extract_strided_slice %3 {offsets = [0, 288], sizes = [8, 32], strides = [1, 1]} : vector<8x320xf32> to vector<8x32xf32>
    %62 = vector.shape_cast %60 : vector<8x1xi1> to vector<8x1xi1>
    %63 = vector.broadcast %62 : vector<8x1xi1> to vector<8x32xi1>
    %64 = arith.select %63, %61, %58 : vector<8x32xi1>, vector<8x32xf32>
    %c0_6 = arith.constant 0 : index
    %c0_7 = arith.constant 0 : index
    %65 = vector.load %arg3[%c0_6, %c0_7] : memref<8x32xf32, #tpu.memory_space<vmem>>, vector<8x32xf32>
    tpu.vector_store %arg3[%c0_6, %c0_7], %64 {strides = array<i32>} : memref<8x32xf32, #tpu.memory_space<vmem>>, vector<8x32xf32>,
    return
  }
}

</mosaic_0001>

<bundles_post_ra>
// kernel: tpu_custom_call.1
= control target key start
LH: loop header
LB: loop body
LE: loop exit
PB: predicated region body
PF: predicated region fallthrough
CT: control target
= control target key end

     0   :  { %8 = vsyncpa [#allocation3], 0  ;;  %s450_s0 = inlined_call_operand.vmem [shape: s32[8,1], index: 0, kind: input, shape index: {}]   ;;  %s451_s1 = inlined_call_operand.hbm [shape: bf16[32,320], index: 1, kind: input, shape index: {}]   ;;  %s452_s2 = inlined_call_operand.vmem [shape: bf16[8,32], index: 2, kind: input, shape index: {}]   ;;  %s453_s3 = inlined_call_operand.hbm [shape: f32[8,32], index: 3, kind: output, shape index: {}]  }
   0x1   :  { %9 = vsyncpa [#allocation4], 0  ;;  %s369_s12 = smov [#allocation2]   ;;  %s321_s16 = scalar_lea.hbm %s451_s1, 768 }
   0x2   :  { %s17_s13 = sshll.u32 %s369_s12, 4  ;;  %p322_p0 = scmp.ne.s32.totalorder %s451_s1, %s321_s16  ;;  %s18_s13 = int_to_ptr.vmem [resolvable:$true] %s17_s13 }
   0x3   :  { %p325_p1 = scmp.lt.u32.totalorder %s321_s16, %s451_s1 }
   0x5   :  { %p327_p2 = pnand %p325_p1, %p322_p0 }
   0x7   :  { %330 = shalt.err (!%p327_p2)
}
   0x8   :  { %s331_s21 = scalar_lea.vmem %s18_s13, 768  ;;  %p336_p4 = scmp.lt.s32.totalorder %s18_s13, %s18_s13 }
   0x9   :  { %p332_p3 = scmp.ne.s32.totalorder %s18_s13, %s331_s21  ;;  %p337_p5 = scmp.lt.s32.totalorder %s331_s21, %s331_s21 }
   0xb   :  { %p338_p6 = por %p337_p5, %p336_p4 }
   0xd   :  { %p339_p7 = pnand %p338_p6, %p332_p3 }
   0xf   :  { %342 = shalt.err (!%p339_p7)
}
  0x10   :  { %s370_s22 = smov 192   ;;  %s371_s23 = smov 12  }
  0x11   :  { %23 = dma.hbm_to_vmem [thread:$0]  %s451_s1, 768, %s18_s13, [#allocation3], %s370_s22, %s370_s22, %s371_s23  }
  0x12   :  { %365 = dma.done.wait [#allocation3], 768  }
  0x13   :  { %366 = vsyncadd [#allocation3], 4294966528  ;;  %v372_v0 = vmov 0   ;;  %v313_v1 = vld [vmem:[#allocation2 + $0x4] ss:$12 sps:$4 sm:$0xff]   ;;  %vm72_vm2 = vcmask 261120  }
  0x14   :  { %108 = vmatprep.mubr.bf16.mxu0 %v372_v0  ;;  %311 = vset.pattern.permute.xlu0 %v372_v0  ;;  %v315_v2 = vld [vmem:[#allocation2] ss:$12 sps:$4 sm:$0xff]   ;;  %v316_v3 = vld [vmem:[#allocation2 + $0x1c] ss:$12 sps:$4 sm:$0xff]   ;;  %v318_v4 = vld [vmem:[#allocation2 + $0x18] ss:$12 sps:$4 sm:$0xff]  }
  0x15   :  { %312 = vset.pattern.permute.xlu1 %v372_v0  ;;  %76 = vmatprep.subr.bf16.mxu0 %v313_v1  ;;  %v30_v5 = vld [vmem:[%s450_s0] sm:$0xff]  ;;  %s373_s0 = smov 32   ;;  %v374_v36 = vmov 0.0   ;;  %v320_v37 = vld [vmem:[#allocation2 + $0x20] ss:$12 sps:$4 sm:$0xff]   ;;  %s377_s29 = smov [#allocation5]  }
  0x16   :  { %77 = vmatpush1.bf16.msra.mxu0 %v315_v2  ;;  %vm157_vm0 = vcmp.eq.s32.totalorder %v30_v5, 0  ;;  %vm164_vm1 = vcmp.eq.s32.totalorder %v30_v5, 1  ;;  %v416_v7 = vld [vmem:[%s452_s2] sm:$0xf]  ;;  %vm175_vm4 = vcmp.eq.s32.totalorder %v30_v5, 2  ;;  %vm186_vm5 = vcmp.eq.s32.totalorder %v30_v5, 3  ;;  %294 = vmatprep.subr.bf16.mxu1 %v374_v36 }
  0x17   :  { %78 = vmatprep.subr.bf16.mxu0 %v316_v3  ;;  %v158_v6 = vsel %vm157_vm0, 1, %v372_v0  ;;  %v165_v8 = vsel %vm164_vm1, 1, %v372_v0  ;;  %v176_v15 = vsel %vm175_vm4, 1, %v372_v0  ;;  %v187_v16 = vsel %vm186_vm5, 1, %v372_v0  ;;  %v319_v35 = vld [vmem:[#allocation2 + $0x8] ss:$12 sps:$4 sm:$0xff]  }
  0x18   :  { %160 = vperm.xlu0 %311, %v158_v6   ;;  %vm197_vm6 = vcmp.eq.s32.totalorder %v30_v5, 4  ;;  %vm208_vm7 = vcmp.eq.s32.totalorder %v30_v5, 5  ;;  %vm219_vm8 = vcmp.eq.s32.totalorder %v30_v5, 6  ;;  %vm230_vm9 = vcmp.eq.s32.totalorder %v30_v5, 7  ;;  %295 = vmatpush3.bf16.msra.mxu1 %v319_v35  ;;  %s376_s2 = smov 96   ;;  %s274_s30 = sshll.u32 %s377_s29, 4  ;;  %s275_s30 = int_to_ptr.vmem [resolvable:$true] %s274_s30 }
  0x19   :  { %v198_v17 = vsel %vm197_vm6, 1, %v372_v0  ;;  %v209_v18 = vsel %vm208_vm7, 1, %v372_v0  ;;  %v220_v19 = vsel %vm219_vm8, 1, %v372_v0  ;;  %v231_v20 = vsel %vm230_vm9, 1, %v372_v0  ;;  %296 = vmatprep.subr.bf16.mxu1 %v374_v36  ;;  %s343_s4 = scalar_lea.vmem %s275_s30, 128  ;;  %p348_p9 = scmp.lt.s32.totalorder %s275_s30, %s275_s30 }
  0x1a   :  { %79 = vmatpush1.bf16.msra.mxu0 %v318_v4  ;;  %vm241_vm10 = vcmp.eq.s32.totalorder %v30_v5, 8  ;;  %vm252_vm11 = vcmp.eq.s32.totalorder %v30_v5, 9  ;;  %vm375_vm0 = vmmov 0   ;;  %p344_p8 = scmp.ne.s32.totalorder %s275_s30, %s343_s4  ;;  %p349_p10 = scmp.lt.s32.totalorder %s343_s4, %s343_s4 }
  0x1b   :  { %v242_v21 = vsel %vm241_vm10, 1, %v372_v0  ;;  %v253_v22 = vsel %vm252_vm11, 1, %v372_v0  ;;  %298 = vmatprep.mubr.msk.bf16.mxu1 %vm375_vm0, %v374_v36 }
  0x1c   :  { %167 = vperm.xlu0 %311, %v165_v8   ;;  %297 = vmatpush3.bf16.msra.mxu1 %v320_v37  ;;  %p350_p11 = por %p349_p10, %p348_p9 }
  0x1d   :  { %289 = vmatmul.mubr.msk.bf16.vlgmr.msra.gmra.mrb[0].mxu0 %vm72_vm2, %v416_v7 }
  0x1e   :  { %p351_p12 = pnand %p350_p11, %p344_p8 }
  0x1f   :  { %299 = vmatmul.mubr.msk.bf16.vlgmr.msra.gmra.mrb[0].mxu1 %vm72_vm2, %v416_v7 }
  0x97   :  { %v161_v9 = vpop.permute.xlu0 %160 }
  0x98   :  { %vm162_vm3 = vcmp.eq.s32.totalorder %v161_v9, 1 }
  0x9b   :  { %v168_v23 = vpop.permute.xlu0 %167 }
  0x9c   :  { %vm169_vm12 = vcmp.eq.s32.totalorder %v168_v23, 1 }
  0xf0   :  { %v110_v10 = vpop.f32.mrb[0].mxu0 }
  0xf1   :  { %v420_v11 = vpop.f32.mrb[1].mxu0  ;;  %v163_v12 = vsel %vm162_vm3, %v110_v10, 0.0 }
  0xf2   :  { %v114_v13 = vpop.f32.mrb[2].mxu0  ;;  %171 = vrot.lane.b32.xlu1 %v163_v12, %s373_s0  ;;  %v151_v44 = vpop.f32.mrb[0].mxu1 }
  0xf3   :  { %v115_v14 = vpop.f32.mrb[3].mxu0  ;;  %v300_v45 = vpop.f32.mrb[1].mxu1 }
  0xf4   :  { %v154_v46 = vpop.f32.mrb[2].mxu1 }
  0xf5   :  { %v301_v47 = vpop.f32.mrb[3].mxu1 }
  0xf6   :  { %178 = vperm.xlu1 %312, %v176_v15  }
  0xfa   :  { %189 = vperm.xlu1 %312, %v187_v16  }
  0xfe   :  { %200 = vperm.xlu1 %312, %v198_v17  }
 0x102   :  { %211 = vperm.xlu1 %312, %v209_v18  }
 0x106   :  { %222 = vperm.xlu1 %312, %v220_v19  }
 0x10a   :  { %233 = vperm.xlu1 %312, %v231_v20  }
 0x10e   :  { %244 = vperm.xlu1 %312, %v242_v21  }
 0x112   :  { %255 = vperm.xlu1 %312, %v253_v22  }
 0x164   :  { %v172_v24 = vpop.permute.xlu1 %171 }
 0x165   :  { %v174_v25 = vsel %vm169_vm12, %v110_v10, %v172_v24 }
 0x166   :  { %182 = vrot.lane.b32.xlu0 %v174_v25, %s373_s0 }
 0x175   :  { %v179_v26 = vpop.permute.xlu1 %178 }
 0x176   :  { %vm180_vm13 = vcmp.eq.s32.totalorder %v179_v26, 1 }
 0x179   :  { %v190_v29 = vpop.permute.xlu1 %189 }
 0x17a   :  { %vm191_vm14 = vcmp.eq.s32.totalorder %v190_v29, 1 }
 0x17d   :  { %v201_v32 = vpop.permute.xlu1 %200 }
 0x17e   :  { %vm202_vm15 = vcmp.eq.s32.totalorder %v201_v32, 1 }
 0x181   :  { %v212_v38 = vpop.permute.xlu1 %211 }
 0x182   :  { %vm213_vm1 = vcmp.eq.s32.totalorder %v212_v38, 1 }
 0x185   :  { %v223_v41 = vpop.permute.xlu1 %222 }
 0x186   :  { %vm224_vm3 = vcmp.eq.s32.totalorder %v223_v41, 1 }
 0x189   :  { %v234_v48 = vpop.permute.xlu1 %233 }
 0x18a   :  { %vm235_vm4 = vcmp.eq.s32.totalorder %v234_v48, 1 }
 0x18d   :  { %v245_v51 = vpop.permute.xlu1 %244 }
 0x18e   :  { %vm246_vm5 = vcmp.eq.s32.totalorder %v245_v51, 1 }
 0x191   :  { %v256_v54 = vpop.permute.xlu1 %255 }
 0x192   :  { %vm257_vm6 = vcmp.eq.s32.totalorder %v256_v54, 1 }
 0x1d8   :  { %v183_v27 = vpop.permute.xlu0 %182 }
 0x1d9   :  { %v185_v28 = vsel %vm180_vm13, %v110_v10, %v183_v27 }
 0x1da   :  { %193 = vrot.lane.b32.xlu0 %v185_v28, %s373_s0 }
 0x24c   :  { %v194_v30 = vpop.permute.xlu0 %193 }
 0x24d   :  { %v196_v31 = vsel %vm191_vm14, %v110_v10, %v194_v30 }
 0x24e   :  { %204 = vrot.lane.b32.xlu0 %v196_v31, %s373_s0 }
 0x2c0   :  { %v205_v33 = vpop.permute.xlu0 %204 }
 0x2c1   :  { %v207_v34 = vsel %vm202_vm15, %v420_v11, %v205_v33 }
 0x2c2   :  { %215 = vrot.lane.b32.xlu0 %v207_v34, %s373_s0 }
 0x334   :  { %v216_v39 = vpop.permute.xlu0 %215 }
 0x335   :  { %v218_v40 = vsel %vm213_vm1, %v420_v11, %v216_v39 }
 0x336   :  { %226 = vrot.lane.b32.xlu0 %v218_v40, %s373_s0 }
 0x3a8   :  { %v227_v42 = vpop.permute.xlu0 %226 }
 0x3a9   :  { %v229_v43 = vsel %vm224_vm3, %v420_v11, %v227_v42 }
 0x3aa   :  { %237 = vrot.lane.b32.xlu0 %v229_v43, %s373_s0 }
 0x41c   :  { %v238_v49 = vpop.permute.xlu0 %237 }
 0x41d   :  { %v240_v50 = vsel %vm235_vm4, %v420_v11, %v238_v49 }
 0x41e   :  { %248 = vrot.lane.b32.xlu0 %v240_v50, %s373_s0 }
 0x490   :  { %v249_v52 = vpop.permute.xlu0 %248 }
 0x491   :  { %v251_v53 = vsel %vm246_vm5, %v151_v44, %v249_v52 }
 0x492   :  { %259 = vrot.lane.b32.xlu0 %v251_v53, %s373_s0 }
 0x504   :  { %v260_v55 = vpop.permute.xlu0 %259 }
 0x505   :  { %v262_v56 = vsel %vm257_vm6, %v151_v44, %v260_v55 }
 0x506   :  { %264 = vrot.lane.b32.xlu1 %v262_v56, %s376_s2 }
 0x578   :  { %v265_v57 = vpop.permute.xlu1 %264 }
 0x579   :  { %267 = vst.msk [vmem:[#allocation5] sm:$0xff] %vm72_vm2, %v265_v57 }
 0x57a   :  { %354 = shalt.err (!%p351_p12)
}
 0x57b   :  { %s355_s7 = scalar_lea.hbm %s453_s3, 128 }
 0x57c   :  { %p356_p13 = scmp.ne.s32.totalorder %s453_s3, %s355_s7  ;;  %p359_p0 = scmp.lt.u32.totalorder %s355_s7, %s453_s3 }
 0x57e   :  { %p361_p1 = pnand %p359_p0, %p356_p13 }
 0x580   :  { %364 = shalt.err (!%p361_p1)
}
 0x581   :  { %277 = dma.vmem_to_hbm [thread:$0]  %s275_s30, 128, %s453_s3, [#allocation4]  }
 0x582   :  { %367 = dma.done.wait [#allocation4], 128  }
 0x583   :  { %368 = vsyncadd [#allocation4], 4294967168 }
 0x584   :  { %281 = vsyncpa [#allocation3], 1 }
 0x585   :  { %282 = vsyncpa [#allocation4], 1 }

</bundles_post_ra>
